<compile_context>
chip_gen: v5e
topology: v5e:2x2
jax: 0.10.0
libtpu: 0.0.40
codegen_flags: <defaults>
</compile_context>

<pallas_src>
import numpy as np
import jax
import jax.numpy as jnp
from jax.experimental import pallas as pl
from jax.experimental.pallas import tpu as pltpu

LANES = 128
_EPS = 1e-10


def _build_alpha(num_class, alpha, balance_index):
    """Mirror MultiFocalLoss.__init__ alpha handling; returns np.float32[num_class]."""
    if alpha is None:
        return np.ones((num_class,), np.float32)
    if isinstance(alpha, (list, tuple, np.ndarray)):
        a = np.asarray(alpha, np.float32).reshape(-1)
        assert a.shape[0] == num_class
        return a / a.sum()
    if isinstance(alpha, float):
        a = np.ones((num_class,), np.float32) * (1.0 - alpha)
        a[balance_index] = alpha
        return a
    raise TypeError('Not support alpha type')


def _pow_gamma(x, gamma):
    g = float(gamma)
    if g == int(g) and 0 <= int(g) <= 8:
        n = int(g)
        if n == 0:
            return jnp.ones_like(x)
        out = x
        for _ in range(n - 1):          # integer gamma: VPU multiplies, no EUP pow
            out = out * x
        return out
    # TODO(synk): non-integer gamma with pt ~ 1 can give NaN ((1-pt) slightly < 0),
    # matching the PyTorch reference's behavior.
    return jnp.power(x, g)


def _make_kernel(num_class, gamma, smooth, tile_s, s_len, has_alpha):
    C = num_class
    n_groups = tile_s // LANES

    def _lane_fold(v):                  # (1, tile_s) -> (1, 128): tile-aligned slices + adds
        acc = v[:, 0:LANES]
        for j in range(1, n_groups):
            acc = acc + v[:, j * LANES:(j + 1) * LANES]
        return acc

    def body(x_ref, t_ref, a_ref, focal_ref, alpha_ref):
        x = x_ref[0].astype(jnp.float32)          # (C, tile_s) — cast in-kernel only
        t = t_ref[0]                              # (1, tile_s) int32, -1 = padding

        # Mask lanes past the (possibly ragged) array end + sentinel-padded lanes.
        pos = pl.program_id(1) * tile_s + jax.lax.broadcasted_iota(
            jnp.int32, (1, tile_s), 1)
        valid = (pos < s_len) & (t >= 0)

        # Numerically-stable softmax over the class (sublane) axis.
        m = jnp.max(x, axis=0, keepdims=True)     # (1, tile_s)
        e = jnp.exp(x - m)                        # (C, tile_s)
        z = jnp.sum(e, axis=0, keepdims=True)     # (1, tile_s)

        # One-hot selection as a boolean mask (replaces scatter_; no f32 one-hot).
        cls = jax.lax.broadcasted_iota(jnp.int32, (C, tile_s), 0)
        sel = cls == t                            # (C, tile_s) bool
        num = jnp.sum(jnp.where(sel, e, 0.0), axis=0, keepdims=True)

        p = num * pl.reciprocal(z, approx=False)  # divide on the EUP slot
        if smooth:
            # clip(one_hot, s, 1-s) dotted with softmax == (1-2s)*p_t + s (s <= 0.5)
            pt = (1.0 - 2.0 * float(smooth)) * p + float(smooth) + _EPS
        else:
            pt = p + _EPS
        logpt = jnp.log(pt)
        focal = _pow_gamma(1.0 - pt, gamma) * (-logpt)
        focal = jnp.where(valid, focal, 0.0)
        focal_ref[0] = _lane_fold(focal)          # lane-dense (1, 128) partial sum

        if has_alpha:
            a = a_ref[...]                        # (C, 1)
            a_sel = jnp.sum(jnp.where(sel, a, 0.0), axis=0, keepdims=True)
            a_sel = jnp.where(valid, a_sel, 0.0)
            alpha_ref[0] = _lane_fold(a_sel)

    if has_alpha:
        def kernel(x_ref, t_ref, a_ref, focal_ref, alpha_ref):
            body(x_ref, t_ref, a_ref, focal_ref, alpha_ref)
    else:
        def kernel(x_ref, t_ref, focal_ref):
            body(x_ref, t_ref, None, focal_ref, None)
    return kernel


def multi_focal_loss(x, target, num_class, alpha=None, gamma=2, balance_index=-1,
                     smooth=None, size_average=True,
                     vmem_budget_bytes=16 * 1024 * 1024, max_tile_s=16 * 1024):
    if smooth is not None and (smooth < 0 or smooth > 1.0):
        raise ValueError('smooth value should be in [0,1]')
    N, C = int(x.shape[0]), int(x.shape[1])
    assert C == num_class
    S = 1
    for d in x.shape[2:]:
        S *= int(d)

    # Native (N, C, spatial) layout: pure reshapes (no transpose), native dtype.
    x3 = x.reshape(N, C, S)
    t3 = target.reshape(N, 1, S).astype(jnp.int32)

    # Lane padding only if S is not a multiple of 128 (not hit by typical shapes).
    # TODO(synk): a pure position-mask path could avoid this HBM copy for ragged S.
    S_in = S
    if S % LANES != 0:
        pad = LANES - S % LANES
        S_in = S + pad
        x3 = jnp.pad(x3, ((0, 0), (0, 0), (0, pad)))
        t3 = jnp.pad(t3, ((0, 0), (0, 0), (0, pad)), constant_values=-1)

    # Tile the spatial (lane) axis from a VMEM budget that scales with C:
    # double-buffered native-dtype input + ~6 f32 temporaries per loaded element,
    # kept well under the 32 MiB scoped default of every generation (v7x included).
    in_bytes = jnp.dtype(x3.dtype).itemsize
    per_lane = C * (2 * in_bytes + 6 * 4) + 2 * 4
    tile_s = (vmem_budget_bytes // per_lane) // LANES * LANES
    tile_s = max(LANES, min(tile_s, max_tile_s, S_in))
    grid = (N, pl.cdiv(S_in, tile_s))

    has_alpha = alpha is not None
    kernel = _make_kernel(C, gamma, smooth, tile_s, S_in, has_alpha)

    in_specs = [
        pl.BlockSpec((1, C, tile_s), lambda n, s: (n, 0, s)),
        pl.BlockSpec((1, 1, tile_s), lambda n, s: (n, 0, s)),
    ]
    out_shapes = [jax.ShapeDtypeStruct((N, 1, grid[1] * LANES), jnp.float32)]
    out_specs = [pl.BlockSpec((1, 1, LANES), lambda n, s: (n, 0, s))]
    args = [x3, t3]
    if has_alpha:
        alpha_vec = _build_alpha(C, alpha, balance_index)
        args.append(jnp.asarray(alpha_vec).reshape(C, 1))
        in_specs.append(pl.BlockSpec((C, 1), lambda n, s: (0, 0)))
        out_shapes.append(jax.ShapeDtypeStruct((N, 1, grid[1] * LANES), jnp.float32))
        out_specs.append(pl.BlockSpec((1, 1, LANES), lambda n, s: (n, 0, s)))

    outs = pl.pallas_call(
        kernel,
        out_shape=tuple(out_shapes),
        grid=grid,
        in_specs=in_specs,
        out_specs=tuple(out_specs),
        compiler_params=pltpu.CompilerParams(
            dimension_semantics=("parallel", "parallel"),   # independent partials
            vmem_limit_bytes=32 * 1024 * 1024,
        ),
    )(*args)
    if not isinstance(outs, (tuple, list)):
        outs = (outs,)

    M = jnp.float32(N * S)
    focal_sum = jnp.sum(outs[0])
    if not has_alpha:
        # alpha[target] == 1 everywhere: the (M,1,1)x(M,) broadcast factor is exact.
        return focal_sum / M if size_average else focal_sum * M
    alpha_sum = jnp.sum(outs[1])
    if size_average:
        # Reproduces the module's (M,1,1) x (M,) broadcast: the mean factorizes.
        return (alpha_sum / M) * (focal_sum / M)
    return alpha_sum * focal_sum


def _reference(x, target, num_class, alpha=None, gamma=2, balance_index=-1,
               smooth=None, size_average=True):
    """Pure-JAX transcription of MultiFocalLoss.forward (incl. its broadcast)."""
    alpha_vec = jnp.asarray(_build_alpha(num_class, alpha, balance_index))
    N, C = x.shape[0], x.shape[1]
    logit = jax.nn.softmax(x.astype(jnp.float32), axis=1)
    logit = jnp.moveaxis(logit.reshape(N, C, -1), 1, 2).reshape(-1, C)   # (M, C)
    tgt = target.reshape(-1)
    one_hot = jax.nn.one_hot(tgt, num_class, dtype=jnp.float32)
    if smooth:
        one_hot = jnp.clip(one_hot, smooth, 1.0 - smooth)
    pt = jnp.sum(one_hot * logit, axis=1) + _EPS
    logpt = jnp.log(pt)
    a = alpha_vec[tgt][:, None, None]                        # (M,1,1) as in torch
    loss = -1.0 * a * jnp.power(1.0 - pt, gamma) * logpt     # broadcasts to (M,1,M)
    return loss.mean() if size_average else loss.sum()


if __name__ == "__main__":
    key = jax.random.PRNGKey(0)
    k1, k2 = jax.random.split(key)

    # Small NCHW logit map + integer class targets, consistent with the module.
    N, C, H, W = 2, 4, 16, 16
    x = jax.random.normal(k1, (N, C, H, W), dtype=jnp.float32)
    target = jax.random.randint(k2, (N, H, W), 0, C, dtype=jnp.int32)

    # Default configuration: alpha=None, gamma=2, mean reduction.
    loss = jax.block_until_ready(multi_focal_loss(x, target, num_class=C))
    ref = _reference(x, target, num_class=C)
    assert jnp.allclose(loss, ref, rtol=1e-5, atol=1e-6), (loss, ref)

    # Also exercise the alpha + label-smoothing + sum-reduction path.
    alpha = [1.0, 2.0, 3.0, 4.0]
    loss2 = jax.block_until_ready(
        multi_focal_loss(x, target, num_class=C, alpha=alpha, gamma=2,
                         smooth=0.1, size_average=False))
    ref2 = _reference(x, target, num_class=C, alpha=alpha, gamma=2,
                      smooth=0.1, size_average=False)
    assert jnp.allclose(loss2, ref2, rtol=1e-5, atol=1e-4), (loss2, ref2)

    print("KERNEL_OK")
</pallas_src>

<mosaic_0001>
module attributes {stable_mosaic.version = 11 : i64} {
  func.func @kernel(%arg0: i32, %arg1: i32, %arg2: memref<1x4x256xf32, #tpu.memory_space<vmem>>, %arg3: memref<1x1x256xi32, #tpu.memory_space<vmem>>, %arg4: memref<1x1x128xf32, #tpu.memory_space<vmem>>) attributes {dimension_semantics = [#tpu.dimension_semantics<parallel>, #tpu.dimension_semantics<parallel>], iteration_bounds = array<i64: 2, 1>, scalar_prefetch = 0 : i64, scratch_operands = 0 : i64, tpu.core_type = #tpu.core_type<tc>, window_params = [{transform_indices = @transform_0, window_bounds = array<i64: 1, 4, 256>}, {transform_indices = @transform_1, window_bounds = array<i64: 1, 1, 256>}, {transform_indices = @transform_2, window_bounds = array<i64: 1, 1, 128>}]} {
    %c0 = arith.constant 0 : index
    %c0_0 = arith.constant 0 : index
    %c0_1 = arith.constant 0 : index
    %0 = vector.load %arg2[%c0, %c0_0, %c0_1] : memref<1x4x256xf32, #tpu.memory_space<vmem>>, vector<1x4x256xf32>
    %1 = vector.shape_cast %0 : vector<1x4x256xf32> to vector<4x256xf32>
    %c0_2 = arith.constant 0 : index
    %c0_3 = arith.constant 0 : index
    %c0_4 = arith.constant 0 : index
    %2 = vector.load %arg3[%c0_2, %c0_3, %c0_4] : memref<1x1x256xi32, #tpu.memory_space<vmem>>, vector<1x1x256xi32>
    %3 = vector.shape_cast %2 : vector<1x1x256xi32> to vector<1x256xi32>
    %c256_i32 = arith.constant 256 : i32
    %4 = arith.muli %arg1, %c256_i32 : i32
    %5 = tpu.iota {dimensions = array<i32: 1>} : vector<1x256xi32>
    %6 = vector.broadcast %4 : i32 to vector<1x256xi32>
    %7 = arith.addi %6, %5 : vector<1x256xi32>
    %c256_i32_5 = arith.constant 256 : i32
    %8 = vector.broadcast %c256_i32_5 : i32 to vector<1x256xi32>
    %9 = arith.cmpi slt, %7, %8 : vector<1x256xi32>
    %c0_i32 = arith.constant 0 : i32
    %10 = vector.broadcast %c0_i32 : i32 to vector<1x256xi32>
    %11 = arith.cmpi sge, %3, %10 : vector<1x256xi32>
    %12 = arith.andi %9, %11 : vector<1x256xi1>
    %cst = arith.constant dense<0xFF800000> : vector<256xf32>
    %13 = vector.multi_reduction <maximumf>, %1, %cst [0] : vector<4x256xf32> to vector<256xf32>
    %14 = vector.shape_cast %13 : vector<256xf32> to vector<1x256xf32>
    %15 = vector.broadcast %14 : vector<1x256xf32> to vector<4x256xf32>
    %16 = arith.subf %1, %15 : vector<4x256xf32>
    %17 = math.exp %16 : vector<4x256xf32>
    %cst_6 = arith.constant dense<0.000000e+00> : vector<256xf32>
    %18 = vector.multi_reduction <add>, %17, %cst_6 [0] : vector<4x256xf32> to vector<256xf32>
    %19 = vector.shape_cast %18 : vector<256xf32> to vector<1x256xf32>
    %20 = tpu.iota {dimensions = array<i32: 0>} : vector<4x256xi32>
    %21 = vector.broadcast %3 : vector<1x256xi32> to vector<4x256xi32>
    %22 = arith.cmpi eq, %20, %21 : vector<4x256xi32>
    %cst_7 = arith.constant 0.000000e+00 : f32
    %23 = vector.broadcast %cst_7 : f32 to vector<4x256xf32>
    %24 = arith.select %22, %17, %23 : vector<4x256xi1>, vector<4x256xf32>
    %cst_8 = arith.constant dense<0.000000e+00> : vector<256xf32>
    %25 = vector.multi_reduction <add>, %24, %cst_8 [0] : vector<4x256xf32> to vector<256xf32>
    %26 = vector.shape_cast %25 : vector<256xf32> to vector<1x256xf32>
    %27 = tpu.reciprocal %19 : vector<1x256xf32> -> vector<1x256xf32>
    %28 = arith.mulf %26, %27 : vector<1x256xf32>
    %cst_9 = arith.constant 1.000000e-10 : f32
    %29 = vector.broadcast %cst_9 : f32 to vector<1x256xf32>
    %30 = arith.addf %28, %29 : vector<1x256xf32>
    %31 = math.log %30 : vector<1x256xf32>
    %cst_10 = arith.constant 1.000000e+00 : f32
    %32 = vector.broadcast %cst_10 : f32 to vector<1x256xf32>
    %33 = arith.subf %32, %30 : vector<1x256xf32>
    %34 = arith.mulf %33, %33 : vector<1x256xf32>
    %cst_11 = arith.constant 0.000000e+00 : f32
    %35 = vector.broadcast %cst_11 : f32 to vector<1x256xf32>
    %36 = arith.subf %35, %31 : vector<1x256xf32>
    %37 = arith.mulf %34, %36 : vector<1x256xf32>
    %cst_12 = arith.constant 0.000000e+00 : f32
    %38 = vector.broadcast %cst_12 : f32 to vector<1x256xf32>
    %39 = arith.select %12, %37, %38 : vector<1x256xi1>, vector<1x256xf32>
    %40 = vector.extract_strided_slice %39 {offsets = [0, 0], sizes = [1, 128], strides = [1, 1]} : vector<1x256xf32> to vector<1x128xf32>
    %41 = vector.extract_strided_slice %39 {offsets = [0, 128], sizes = [1, 128], strides = [1, 1]} : vector<1x256xf32> to vector<1x128xf32>
    %42 = arith.addf %40, %41 : vector<1x128xf32>
    %c0_13 = arith.constant 0 : index
    %c0_14 = arith.constant 0 : index
    %c0_15 = arith.constant 0 : index
    %43 = vector.load %arg4[%c0_13, %c0_14, %c0_15] : memref<1x1x128xf32, #tpu.memory_space<vmem>>, vector<1x1x128xf32>
    %44 = vector.shape_cast %43 : vector<1x1x128xf32> to vector<1x128xf32>
    %45 = vector.shape_cast %42 : vector<1x128xf32> to vector<1x1x128xf32>
    tpu.vector_store %arg4[%c0_13, %c0_14, %c0_15], %45 {strides = array<i32>} : memref<1x1x128xf32, #tpu.memory_space<vmem>>, vector<1x1x128xf32>,
    return
  }
  func.func @transform_0(%arg0: i32, %arg1: i32) -> (i32, i32, i32) {
    %c0_i32 = arith.constant 0 : i32
    %c0_i32_0 = arith.constant 0 : i32
    return %arg0, %c0_i32, %arg1 : i32, i32, i32
  }
  func.func @transform_1(%arg0: i32, %arg1: i32) -> (i32, i32, i32) {
    %c0_i32 = arith.constant 0 : i32
    %c0_i32_0 = arith.constant 0 : i32
    return %arg0, %c0_i32, %arg1 : i32, i32, i32
  }
  func.func @transform_2(%arg0: i32, %arg1: i32) -> (i32, i32, i32) {
    %c0_i32 = arith.constant 0 : i32
    %c0_i32_0 = arith.constant 0 : i32
    return %arg0, %c0_i32, %arg1 : i32, i32, i32
  }
}

</mosaic_0001>

<bundles_post_ra>
// kernel: tpu_custom_call.1
= control target key start
LH: loop header
LB: loop body
LE: loop exit
PB: predicated region body
PF: predicated region fallthrough
CT: control target
= control target key end

     0   :  { %7 = vsyncpa [#allocation3], 0  ;;  %s892_s0 = inlined_call_operand.hbm [shape: f32[2,4,256], index: 0, kind: input, shape index: {}]   ;;  %s893_s1 = inlined_call_operand.hbm [shape: s32[2,1,256], index: 1, kind: input, shape index: {}]   ;;  %s894_s2 = inlined_call_operand.hbm [shape: f32[2,1,128], index: 2, kind: output, shape index: {}]  }
   0x1   :  { %9 = vsyncpa [#allocation3 + $0x1], 0 }
   0x2   :  { %10 = vsyncpa [#allocation6], 0 }
   0x3   :  { %12 = vsyncpa [#allocation6 + $0x1], 0 }
   0x4   :  { %13 = vsyncpa [#allocation4], 0 }
   0x5   :  { %15 = vsyncpa [#allocation4 + $0x1], 0  ;;  %s741_s9 = smov 0   ;;  %s743_s10 = smov 0  }
   0x6   :  { %s745_s11 = smov 0   ;;  %s747_s12 = smov 0  }
   0x7   :  { %s749_s13 = smov 0   ;;  %s751_s14 = smov 0  }
   0x8 LB: > { %s484_s15 = sadd.s32 4294967295, %s723_s14   ;;  %s485_s16 = sadd.s32 4294967294, %s723_s14   ;;  %s723_s14 = sphi %s751_s14, %s21_s14   ;;  %s719_s13 = sphi %s749_s13, %s904_s13   ;;  %s715_s12 = sphi %s747_s12, %s903_s12   ;;  %s711_s11 = sphi %s745_s11, %s902_s11   ;;  %s707_s10 = sphi %s743_s10, %s901_s10   ;;  %s703_s9 = sphi %s741_s9, %s900_s9  }
   0x9   : > { %s33_s17 = sadd.s32 1, %s719_s13  ;;  %s42_s18 = sadd.s32 1, %s711_s11 }
   0xa   : > { %p35_p0 = scmp.ge.s32.totalorder %s33_s17, 2  ;;  %p49_p1 = scmp.ne.s32.totalorder %s711_s11, %s707_s10 }
   0xb   : > { %p50_p2 = scmp.eq.s32.totalorder %s723_s14, 0  ;;  %p55_p3 = scmp.ne.s32.totalorder %s707_s10, %s703_s9 }
   0xc   : > { %s906_s17 = smov (%p35_p0, %s33_s17), 0  ;;  %p56_p5 = scmp.eq.s32.totalorder %s484_s15, 0 }
   0xd   : > { %p782_p4 = por %p50_p2, %p49_p1  ;;  %s37_s20 = ssub.s32 %s719_s13, %s906_s17 }
   0xe   : > { %p109_p6 = scmp.eq.s32.totalorder %s484_s15, 1  ;;  %p40_p7 = scmp.eq.s32.totalorder %s37_s20, 0 }
   0xf   : > { %p788_p8 = por %p56_p5, %p55_p3  ;;  %p115_p10 = scmp.eq.s32.totalorder %s485_s16, 1 }
  0x10   : > { %p792_p9 = por %p109_p6, %p49_p1  ;;  %p487_p12 = scmp.ge.s32.totalorder %s723_s14, 2 }
  0x11   : > { %s797_s23 = scalar_select %p40_p7, %s711_s11, %s42_s18  }
  0x12   : > { %p799_p11 = por %p115_p10, %p55_p3  ;;  %p516_p13 = scmp.lt.s32.totalorder %s723_s14, 2 }
  0x13   : > { %s135_s25 = sand.u32 1, %s711_s11   ;;  %s498_s27 = sshll.u32 %s719_s13, 3 }
  0x14   : > { %s488_s26 = sshll.u32 %s135_s25, 3  ;;  %s146_s30 = scalar_lea.hbm %s892_s0, %s498_s27 }
  0x15   : > { %s139_s3 = scalar_lea.vmem [#allocation2], %s488_s26  ;;  %s148_s5 = sshll.u32 %s146_s30, 4  ;;  %s149_s5 = int_to_ptr.hbm [resolvable:$true] %s148_s5 }
  0x16   : > { %s150_s4 = sshll.u32 %s139_s3, 4  ;;  %p812_p0 = pnand %p516_p13, %p782_p4  ;;  %s151_s4 = int_to_ptr.vmem [resolvable:$true] %s150_s4 }
  0x17   : > { %p493_p1 = scmp.ge.s32.totalorder %s723_s14, 1  ;;  %p176_p2 = scmp.lt.s32.totalorder %s723_s14, 3 }
  0x18   : > { %s136_s7 = scalar_lea.sflag [#allocation3], %s135_s25  ;;  %s491_s8 = sshll.u32 %s135_s25, 1 }
  0x19   : > { %508 = dma.hbm_to_vmem [thread:$0]  (!%p812_p0), %s149_s5, 128, %s151_s4, %s136_s7  }
  0x1a   : > { %p177_p3 = pnand %p493_p1, %p176_p2  ;;  %s492_s15 = sshll.u32 %s719_s13, 1 }
  0x1b   : > { %s167_s20 = scalar_lea.hbm %s893_s1, %s492_s15  ;;  %s161_s26 = scalar_lea.vmem [#allocation5], %s491_s8 }
  0x1c   : > { %s171_s19 = sshll.u32 %s161_s26, 4  ;;  %s169_s27 = sshll.u32 %s167_s20, 4  ;;  %s172_s19 = int_to_ptr.vmem [resolvable:$true] %s171_s19  ;;  %s170_s27 = int_to_ptr.hbm [resolvable:$true] %s169_s27 }
  0x1d   : > { %s158_s28 = scalar_lea.sflag [#allocation6], %s135_s25  ;;  %180 = sbr.rel (%p177_p3) target bundleno = 136 (0x88), region = 28 }
  0x1e   : > { %511 = dma.hbm_to_vmem [thread:$0]  (!%p812_p0), %s170_s27, 32, %s172_s19, %s158_s28  }
  0x1f   : > { %s827_s29 = sand.u32 (!%p177_p3), 1, %s707_s10  }
  0x20   : > { %s494_s30 = sshll.u32 (!%p177_p3), %s827_s29, 3  ;;  %s183_s3 = scalar_lea.sflag (!%p177_p3), [#allocation3], %s827_s29 }
  0x21   : > { %s186_s4 = scalar_lea.vmem (!%p177_p3), [#allocation2], %s494_s30 }
  0x22   : > { %690 = dma.done.wait (%p788_p8), %s183_s3, 128  }
  0x23   : > { %692 = vsyncadd (%p788_p8), %s183_s3, 4294967168  ;;  %s495_s25 = sshll.u32 %s827_s29, 1  ;;  %s193_s5 = scalar_lea.sflag [#allocation6], %s827_s29 }
  0x24   : > { %s196_s6 = scalar_lea.vmem [#allocation5], %s495_s25 }
  0x25   : > { %694 = dma.done.wait (%p788_p8), %s193_s5, 32  }
  0x26   : > { %696 = vsyncadd (%p788_p8), %s193_s5, 4294967264  ;;  %v224_v0 = vld [vmem:[%s186_s4] sm:$0xff]  ;;  %vm249_vm0 = vcmask 1043456   ;;  %v292_v22 = vlaneseq  ;;  %v844_v23 = vld [vmem:[%s196_s6] sm:$0x3]  ;;  %s377_s8 = scalar_lea.hbm %s894_s2, %s715_s12  ;;  %s221_s15 = scalar_lea.vmem [#allocation7], %s827_s29 }
  0x27   : > { %244 = vst [vmem:[#allocation1] ss:$2 sm:$0xff] %v224_v0  ;;  %v294_v31 = vperm.slane %v844_v23, 0  ;;  %v295_v32 = vperm.slane %v844_v23, 1  ;;  %vm235_vm11 = vcmp.ge.s32.totalorder %v844_v23, 0  ;;  %s379_s16 = sshll.u32 %s221_s15, 4  ;;  %s380_s16 = int_to_ptr.vmem [resolvable:$true] %s379_s16 }
  0x28   : > { %v293_v28 = vshrl.u32 %v292_v22, 7  ;;  %s381_s18 = sshll.u32 %s377_s8, 4  ;;  %s368_s20 = scalar_lea.sflag [#allocation4], %s827_s29  ;;  %s382_s18 = int_to_ptr.hbm [resolvable:$true] %s381_s18 }
  0x29   : > { %s651_s26 = sshra.s32 %s382_s18, 4  ;;  %s657_s28 = scalar_lea.hbm %s894_s2, 2  ;;  %s652_s26 = int_to_ptr.hbm [resolvable:$true] %s651_s26 }
  0x2a   : > { %vm296_vm1 = vcmp.eq.s32.totalorder %v293_v28, %v294_v31  ;;  %vm297_vm2 = vcmp.eq.s32.totalorder %v293_v28, %v295_v32  ;;  %s653_s12 = scalar_lea.hbm %s652_s26, 1  ;;  %p658_p7 = scmp.lt.s32.totalorder %s652_s26, %s894_s2 }
  0x2b   : > { %p654_p4 = scmp.ne.s32.totalorder %s652_s26, %s653_s12  ;;  %p659_p8 = scmp.lt.s32.totalorder %s657_s28, %s653_s12 }
  0x2d   : > { %p655_p5 = pnand %p654_p4, %p792_p9  ;;  %p660_p10 = por %p659_p8, %p658_p7 }
  0x2e   : > { %v245_v1 = vld.sshfl [vmem:[#allocation1] sm:$0xff pattern:$0x75316420]  ;;  %v246_v2 = vld.sshfl [vmem:[#allocation1 + $0x8] sm:$0xff pattern:$0x75316420] }
  0x2f   : > { %v250_v3 = vsel %vm249_vm0, %v245_v1, -inf  ;;  %v257_v4 = vsel %vm249_vm0, %v246_v2, -inf  ;;  %p656_p6 = pneg %p655_p5 }
  0x30   : > { %v251_v5 = vrot.slane %v250_v3, 4  ;;  %v258_v6 = vrot.slane %v257_v4, 4 }
  0x31   : > { %p661_p13 = pnand %p660_p10, %p656_p6 }
  0x32   : > { %v252_v7 = vmax.f32 %v250_v3, %v251_v5  ;;  %v259_v8 = vmax.f32 %v257_v4, %v258_v6 }
  0x34   : > { %v253_v9 = vrot.slane %v252_v7, 2  ;;  %v260_v10 = vrot.slane %v259_v8, 2 }
  0x36   : > { %v254_v11 = vmax.f32 %v252_v7, %v253_v9  ;;  %v261_v12 = vmax.f32 %v259_v8, %v260_v10 }
  0x38   : > { %v255_v13 = vrot.slane %v254_v11, 1  ;;  %v262_v14 = vrot.slane %v261_v12, 1 }
  0x3a   : > { %v263_v15 = vmax.f32 %v261_v12, %v262_v14  ;;  %v256_v16 = vmax.f32 %v254_v11, %v255_v13 }
  0x3c   : > { %v266_v17 = vrot.slane %v263_v15, 4 }
  0x3e   : > { %v267_v18 = vsel %vm249_vm0, %v256_v16, %v266_v17 }
  0x3f   : > { %v269_v19 = vsub.f32 %v224_v0, %v267_v18 }
  0x41   : > { %v270_v20 = vmul.f32 1.442695, %v269_v19 }
  0x43   : > { %567 = vpow2.f32 %v270_v20 }
  0x49   : > { %v568_v21 = vpop.eup %567 }
  0x4a   : > { %273 = vst [vmem:[#allocation1] ss:$2 sm:$0xff] %v568_v21 }
  0x51   : > { %v274_v24 = vld.sshfl [vmem:[#allocation1] sm:$0xff pattern:$0x75316420]  ;;  %v275_v25 = vld.sshfl [vmem:[#allocation1 + $0x8] sm:$0xff pattern:$0x75316420] }
  0x52   : > { %v278_v26 = vsel %vm249_vm0, %v274_v24, 0.0  ;;  %v285_v27 = vsel %vm249_vm0, %v275_v25, 0.0  ;;  %298 = vst [vmem:[#allocation1] ss:$2 sm:$0xff] %v568_v21  ;;  %v725_v21 = vmov 0  }
  0x53   : > { %v279_v29 = vrot.slane %v278_v26, 4  ;;  %v286_v30 = vrot.slane %v285_v27, 4  ;;  %v236_v22 = vsel %vm235_vm11, 1, %v725_v21 }
  0x55   : > { %v280_v33 = vadd.f32 %v279_v29, %v278_v26  ;;  %v287_v34 = vadd.f32 %v286_v30, %v285_v27  ;;  %v237_v26 = vperm.slane %v236_v22, 0  ;;  %v238_v29 = vperm.slane %v236_v22, 1 }
  0x57   : > { %v281_v35 = vrot.slane %v280_v33, 2  ;;  %v288_v36 = vrot.slane %v287_v34, 2  ;;  %vm239_vm12 = vcmp.ne.s32.totalorder %v237_v26, 0  ;;  %vm240_vm13 = vcmp.ne.s32.totalorder %v238_v29, 0 }
  0x59   : > { %v282_v37 = vadd.f32 %v281_v35, %v280_v33  ;;  %v289_v38 = vadd.f32 %v288_v36, %v287_v34  ;;  %v299_v39 = vld.sshfl [vmem:[#allocation1] sm:$0xff pattern:$0x75316420]  ;;  %v300_v40 = vld.sshfl [vmem:[#allocation1 + $0x8] sm:$0xff pattern:$0x75316420] }
  0x5a   : > { %v303_v41 = vsel %vm296_vm1, %v299_v39, 0.0  ;;  %v304_v42 = vsel %vm297_vm2, %v300_v40, 0.0 }
  0x5b   : > { %v283_v43 = vrot.slane %v282_v37, 1  ;;  %v290_v44 = vrot.slane %v289_v38, 1  ;;  %v305_v45 = vsel %vm249_vm0, %v303_v41, 0.0  ;;  %v312_v46 = vsel %vm249_vm0, %v304_v42, 0.0 }
  0x5c   : > { %v306_v47 = vrot.slane %v305_v45, 4  ;;  %v313_v48 = vrot.slane %v312_v46, 4 }
  0x5d   : > { %v284_v49 = vadd.f32 %v283_v43, %v282_v37  ;;  %v291_v50 = vadd.f32 %v290_v44, %v289_v38 }
  0x5e   : > { %v307_v51 = vadd.f32 %v306_v47, %v305_v45  ;;  %v314_v52 = vadd.f32 %v313_v48, %v312_v46 }
  0x5f   : > { %569 = vrcp.f32 %v284_v49  ;;  %v328_v62 = vand.u32 2147483647, %v284_v49  ;;  %v330_v63 = vand.u32 2147483648, %v284_v49  ;;  %v344_v3 = vand.u32 2147483648, %v291_v50 }
  0x60   : > { %571 = vrcp.f32 %v291_v50  ;;  %v308_v53 = vrot.slane %v307_v51, 2  ;;  %v315_v54 = vrot.slane %v314_v52, 2  ;;  %v342_v6 = vand.u32 2147483647, %v291_v50 }
  0x61   : > { %vm324_vm5 = vweird.f32 %v284_v49  ;;  %v331_v8 = vor.u32 1.1754944e-38, %v330_v63  ;;  %vm338_vm7 = vweird.f32 %v291_v50  ;;  %vm329_vm8 = vcmp.eq.f32.partialorder %v328_v62, 8.507059e+37 }
  0x62   : > { %v309_v57 = vadd.f32 %v308_v53, %v307_v51  ;;  %v316_v59 = vadd.f32 %v315_v54, %v314_v52  ;;  %v345_v12 = vor.u32 1.1754944e-38, %v344_v3  ;;  %vm343_vm10 = vcmp.eq.f32.partialorder %v342_v6, 8.507059e+37 }
  0x64   : > { %v310_v1 = vrot.slane %v309_v57, 1  ;;  %v317_v4 = vrot.slane %v316_v59, 1 }
  0x65   : > { %v570_v55 = vpop.eup %569 }
  0x66   : > { %v572_v56 = vpop.eup %571  ;;  %v320_v58 = vmul.f32 %v570_v55, %v284_v49  ;;  %vm325_vm3 = vweird.f32 %v570_v55  ;;  %v311_v10 = vadd.f32 %v310_v1, %v309_v57  ;;  %v318_v13 = vadd.f32 %v317_v4, %v316_v59 }
  0x67   : > { %v334_v60 = vmul.f32 %v572_v56, %v291_v50  ;;  %vm339_vm4 = vweird.f32 %v572_v56  ;;  %vm326_vm6 = vmor %vm324_vm5, %vm325_vm3 }
  0x68   : > { %v321_v61 = vsub.f32 1.0, %v320_v58  ;;  %vm340_vm9 = vmor %vm338_vm7, %vm339_vm4 }
  0x69   : > { %v335_v0 = vsub.f32 1.0, %v334_v60 }
  0x6a   : > { %v322_v2 = vmul.f32 %v570_v55, %v321_v61 }
  0x6b   : > { %v336_v5 = vmul.f32 %v572_v56, %v335_v0 }
  0x6c   : > { %v323_v7 = vadd.f32 %v570_v55, %v322_v2 }
  0x6d   : > { %v337_v9 = vadd.f32 %v572_v56, %v336_v5 }
  0x6e   : > { %v327_v11 = vsel %vm326_vm6, %v570_v55, %v323_v7 }
  0x6f   : > { %v332_v14 = vsel %vm329_vm8, %v331_v8, %v327_v11  ;;  %v341_v15 = vsel %vm340_vm9, %v572_v56, %v337_v9 }
  0x70   : > { %v346_v16 = vsel %vm343_vm10, %v345_v12, %v341_v15  ;;  %v347_v17 = vmul.f32 %v332_v14, %v311_v10 }
  0x71   : > { %v348_v18 = vmul.f32 %v346_v16, %v318_v13 }
  0x72   : > { %v349_v19 = vadd.f32 1e-10, %v347_v17 }
  0x73   : > { %v350_v20 = vadd.f32 1e-10, %v348_v18 }
  0x74   : > { %573 = vlog2.f32 %v349_v19  ;;  %v355_v24 = vsub.f32 1.0, %v349_v19 }
  0x75   : > { %575 = vlog2.f32 %v350_v20  ;;  %v356_v27 = vsub.f32 1.0, %v350_v20 }
  0x76   : > { %v357_v32 = vmul.f32 %v355_v24, %v355_v24 }
  0x77   : > { %v358_v23 = vmul.f32 %v356_v27, %v356_v27 }
  0x7a   : > { %v574_v25 = vpop.eup %573 }
  0x7b   : > { %v576_v28 = vpop.eup %575  ;;  %v352_v30 = vmul.f32 0.6931472, %v574_v25 }
  0x7c   : > { %v354_v31 = vmul.f32 0.6931472, %v576_v28 }
  0x7d   : > { %v359_v33 = vsub.f32 0.0, %v352_v30 }
  0x7e   : > { %v360_v34 = vsub.f32 0.0, %v354_v31 }
  0x7f   : > { %v361_v35 = vmul.f32 %v359_v33, %v357_v32 }
  0x80   : > { %v362_v36 = vmul.f32 %v360_v34, %v358_v23 }
  0x81   : > { %v363_v37 = vsel %vm239_vm12, %v361_v35, 0.0 }
  0x82   : > { %v364_v38 = vsel %vm240_vm13, %v362_v36, 0.0 }
  0x83   : > { %v365_v39 = vadd.f32 %v364_v38, %v363_v37 }
  0x85   : > { %366 = vst [vmem:[%s221_s15] sm:$0x1] %v365_v39 }
  0x86   : > { %664 = shalt.err (!%p661_p13)
}
  0x87   : > { %503 = dma.vmem_to_hbm [thread:$0]  (%p792_p9), %s380_s16, 16, %s382_s18, %s368_s20  }
  0x88 PF: > { %s393_s29 = sand.u32 1, %s703_s9   ;;  %p513_p0 = pnand %p487_p12, %p799_p11 }
  0x89   : > { %s394_s4 = scalar_lea.sflag [#allocation4], %s393_s29 }
  0x8a   : > { %p514_p1 = pneg %p513_p0 }
  0x8c   : > { %698 = dma.done.wait (%p514_p1), %s394_s4, 16  }
  0x8d   : > { %700 = vsyncadd (%p514_p1), %s394_s4, 4294967280  ;;  %s21_s14 = sadd.s32 1, %s723_s14   ;;  %s900_s9 = smov %s707_s10 }
  0x8e   : > { %p18_p2 = scmp.ge.s32.totalorder %s21_s14, 4   ;;  %s901_s10 = smov %s711_s11 }
  0x8f   : > { %s902_s11 = smov %s797_s23  ;;  %s903_s12 = smov %s719_s13 }
  0x90   : > { %s904_s13 = smov %s906_s17  ;;  %20 = sbr.rel (!%p18_p2) target bundleno = 8 (0x8), region = 86 }
  0x95   :  { %399 = vsyncpa [#allocation3], 1 }
  0x96   :  { %401 = vsyncpa [#allocation3 + $0x1], 1 }
  0x97   :  { %402 = vsyncpa [#allocation6], 1 }
  0x98   :  { %404 = vsyncpa [#allocation6 + $0x1], 1 }
  0x99   :  { %405 = vsyncpa [#allocation4], 1 }
  0x9a   :  { %407 = vsyncpa [#allocation4 + $0x1], 1 }

</bundles_post_ra>
